<compile_context>
chip_gen: v7x
topology: tpu7x:2x2x1
jax: 0.10.0
libtpu: 0.0.40
codegen_flags: <defaults>
</compile_context>

<pallas_src>
import functools

import jax
import jax.numpy as jnp
from jax.experimental import pallas as pl
from jax.experimental.pallas import tpu as pltpu

LANES = 128
MAX_BLOCK_ROWS = 1024  # 512 KiB f32 / input block; x2 inputs x2 pipeline bufs = 2 MiB


def _round_up(x, m):
    return ((x + m - 1) // m) * m


def _dice_bce_partials_kernel(x_ref, t_ref, out_ref, *,
                              total_tiles, rows, block_rows, steps, needs_mask):
    # out_ref block: (1, 4, 8, 128) f32, resident across the inner "arbitrary" axis.
    # Channels: [0]=sum(x*t), [1]=sum(x), [2]=sum(t), [3]=sum(BCE terms)
    c = pl.program_id(0)
    s = pl.program_id(1)

    @pl.when(s == 0)
    def _():
        out_ref[...] = jnp.zeros_like(out_ref)

    tile_idx = c * steps + s

    @pl.when(tile_idx < total_tiles)
    def _():
        x = x_ref[...].astype(jnp.float32)
        t = t_ref[...].astype(jnp.float32)

        if needs_mask:
            # Only the last tile can be partial; OOB rows are unspecified -> zero them.
            row_ids = tile_idx * block_rows + jax.lax.broadcasted_iota(
                jnp.int32, (block_rows, LANES), 0)
            valid = row_ids < rows
            x = jnp.where(valid, x, 0.0)
            t = jnp.where(valid, t, 0.0)

        xt = x * t
        # binary_cross_entropy semantics: logs clamped at -100 (torch behavior).
        # Masked / zero-padded elements (x=0, t=0) contribute exactly 0 here.
        log_p = jnp.maximum(jnp.log(x), -100.0)
        log_1mp = jnp.maximum(jnp.log(1.0 - x), -100.0)
        bce = (t - 1.0) * log_1mp - t * log_p  # == -(t*log_p + (1-t)*log_1mp)

        def fold(v):
            # (block_rows, 128) -> (8, 128) partial sums; sublane-tile aligned reshape,
            # reduction over the leading (non-vreg) axis = cheap VPU adds, no XLU.
            return jnp.sum(v.reshape(block_rows // 8, 8, LANES), axis=0)

        out_ref[0, 0] += fold(xt)
        out_ref[0, 1] += fold(x)
        out_ref[0, 2] += fold(t)
        out_ref[0, 3] += fold(bce)


def dice_bce_loss(inputs, targets, smooth: float = 1.0):
    """inputs/targets: arbitrary shape (e.g. NCHW), inputs are probabilities in [0,1]."""
    assert inputs.shape == targets.shape
    n = int(inputs.size)
    assert n > 0, "DiceBCELoss on empty input is undefined"

    # Keep original dtype (no wrapper cast); cast to f32 inside the kernel.
    x = inputs.reshape(-1)
    t = targets.reshape(-1)

    # Pad only to lane (128) alignment, and only when needed; zero pads contribute 0.
    padded = _round_up(n, LANES)
    if padded != n:
        x = jnp.pad(x, (0, padded - n))
        t = jnp.pad(t, (0, padded - n))
    rows = padded // LANES

    # Sublane multiple by dtype (f32 -> 8, bf16 -> 16, int8/fp8 -> 32).
    sub = max(
        8 * max(1, 4 // jnp.dtype(inputs.dtype).itemsize),
        8 * max(1, 4 // jnp.dtype(targets.dtype).itemsize),
    )
    block_rows = min(MAX_BLOCK_ROWS, _round_up(rows, sub))
    total_tiles = pl.cdiv(rows, block_rows)
    num_chunks = min(2, total_tiles)          # lets both TCs stream HBM on v7x
    steps = pl.cdiv(total_tiles, num_chunks)
    needs_mask = (rows % block_rows) != 0

    x2 = x.reshape(rows, LANES)
    t2 = t.reshape(rows, LANES)

    if num_chunks * steps == total_tiles:
        def in_map(c, s):
            return (c * steps + s, 0)
    else:
        def in_map(c, s):
            # Clamp so we never request a fully out-of-bounds block; the kernel
            # skips the compute for those (tile_idx >= total_tiles) steps.
            return (jnp.minimum(c * steps + s, total_tiles - 1), 0)

    kernel = functools.partial(
        _dice_bce_partials_kernel,
        total_tiles=total_tiles, rows=rows, block_rows=block_rows,
        steps=steps, needs_mask=needs_mask)

    partials = pl.pallas_call(
        kernel,
        out_shape=jax.ShapeDtypeStruct((num_chunks, 4, 8, LANES), jnp.float32),
        grid_spec=pltpu.PrefetchScalarGridSpec(
            num_scalar_prefetch=0,
            grid=(num_chunks, steps),
            in_specs=[
                pl.BlockSpec((block_rows, LANES), in_map),
                pl.BlockSpec((block_rows, LANES), in_map),
            ],
            out_specs=pl.BlockSpec((1, 4, 8, LANES), lambda c, s: (c, 0, 0, 0)),
        ),
        compiler_params=pltpu.CompilerParams(
            dimension_semantics=("parallel", "arbitrary")),
    )(x2, t2)

    # Tiny final combine in JAX: reduce per-chunk vreg partials to 4 scalars.
    sums = jnp.sum(partials, axis=(0, 2, 3))  # [intersection, sum_x, sum_t, bce_sum]
    intersection, sum_x, sum_t, bce_sum = sums[0], sums[1], sums[2], sums[3]
    dice_loss = 1.0 - (2.0 * intersection + smooth) / (sum_x + sum_t + smooth)
    bce = bce_sum / n
    return bce + dice_loss


def _reference(inputs, targets, smooth=1.0):
    x = inputs.reshape(-1).astype(jnp.float32)
    t = targets.reshape(-1).astype(jnp.float32)
    intersection = jnp.sum(x * t)
    dice_loss = 1.0 - (2.0 * intersection + smooth) / (jnp.sum(x) + jnp.sum(t) + smooth)
    log_p = jnp.maximum(jnp.log(x), -100.0)
    log_1mp = jnp.maximum(jnp.log(1.0 - x), -100.0)
    bce = jnp.mean(-(t * log_p + (1.0 - t) * log_1mp))
    return bce + dice_loss


if __name__ == "__main__":
    key = jax.random.PRNGKey(0)
    k1, k2 = jax.random.split(key)
    # NCHW: batch=2, channels=4, spatial=16x16; inputs are probabilities.
    shape = (2, 4, 16, 16)
    inputs = jax.nn.sigmoid(jax.random.normal(k1, shape, dtype=jnp.float32))
    targets = (jax.random.uniform(k2, shape) > 0.5).astype(jnp.float32)

    loss = dice_bce_loss(inputs, targets, smooth=1.0)
    loss = jax.block_until_ready(loss)

    ref = _reference(inputs, targets, smooth=1.0)
    assert jnp.allclose(loss, ref, rtol=1e-5, atol=1e-5), (loss, ref)
    print("KERNEL_OK")
</pallas_src>

<mosaic_0001>
module attributes {stable_mosaic.version = 11 : i64} {
  func.func @_dice_bce_partials_kernel(%arg0: i32, %arg1: i32, %arg2: memref<16x128xf32, #tpu.memory_space<vmem>>, %arg3: memref<16x128xf32, #tpu.memory_space<vmem>>, %arg4: memref<1x4x8x128xf32, #tpu.memory_space<vmem>>) attributes {dimension_semantics = [#tpu.dimension_semantics<parallel>, #tpu.dimension_semantics<arbitrary>], iteration_bounds = array<i64: 1, 1>, scalar_prefetch = 0 : i64, scratch_operands = 0 : i64, tpu.core_type = #tpu.core_type<tc>, window_params = [{transform_indices = @transform_0, window_bounds = array<i64: 16, 128>}, {transform_indices = @transform_1, window_bounds = array<i64: 16, 128>}, {transform_indices = @transform_2, window_bounds = array<i64: 1, 4, 8, 128>}]} {
    %c0_i32 = arith.constant 0 : i32
    %0 = arith.cmpi eq, %arg1, %c0_i32 : i32
    %1 = arith.extui %0 : i1 to i32
    %c0_i32_0 = arith.constant 0 : i32
    %2 = arith.cmpi ne, %1, %c0_i32_0 : i32
    scf.if %2 {
      %cst = arith.constant 0.000000e+00 : f32
      %8 = vector.broadcast %cst : f32 to vector<1x4x8x128xf32>
      %c0 = arith.constant 0 : index
      %c0_3 = arith.constant 0 : index
      %c0_4 = arith.constant 0 : index
      %c0_5 = arith.constant 0 : index
      %9 = vector.load %arg4[%c0, %c0_3, %c0_4, %c0_5] : memref<1x4x8x128xf32, #tpu.memory_space<vmem>>, vector<1x4x8x128xf32>
      tpu.vector_store %arg4[%c0, %c0_3, %c0_4, %c0_5], %8 {strides = array<i32>} : memref<1x4x8x128xf32, #tpu.memory_space<vmem>>, vector<1x4x8x128xf32>,
    } else {
    }
    %c1_i32 = arith.constant 1 : i32
    %3 = arith.muli %arg0, %c1_i32 : i32
    %4 = arith.addi %3, %arg1 : i32
    %c1_i32_1 = arith.constant 1 : i32
    %5 = arith.cmpi slt, %4, %c1_i32_1 : i32
    %6 = arith.extui %5 : i1 to i32
    %c0_i32_2 = arith.constant 0 : i32
    %7 = arith.cmpi ne, %6, %c0_i32_2 : i32
    scf.if %7 {
      %c0 = arith.constant 0 : index
      %c0_3 = arith.constant 0 : index
      %8 = vector.load %arg2[%c0, %c0_3] : memref<16x128xf32, #tpu.memory_space<vmem>>, vector<16x128xf32>
      %c0_4 = arith.constant 0 : index
      %c0_5 = arith.constant 0 : index
      %9 = vector.load %arg3[%c0_4, %c0_5] : memref<16x128xf32, #tpu.memory_space<vmem>>, vector<16x128xf32>
      %10 = arith.mulf %8, %9 : vector<16x128xf32>
      %11 = math.log %8 : vector<16x128xf32>
      %cst = arith.constant -1.000000e+02 : f32
      %12 = vector.broadcast %cst : f32 to vector<16x128xf32>
      %13 = arith.maximumf %11, %12 : vector<16x128xf32>
      %cst_6 = arith.constant 1.000000e+00 : f32
      %14 = vector.broadcast %cst_6 : f32 to vector<16x128xf32>
      %15 = arith.subf %14, %8 : vector<16x128xf32>
      %16 = math.log %15 : vector<16x128xf32>
      %cst_7 = arith.constant -1.000000e+02 : f32
      %17 = vector.broadcast %cst_7 : f32 to vector<16x128xf32>
      %18 = arith.maximumf %16, %17 : vector<16x128xf32>
      %cst_8 = arith.constant 1.000000e+00 : f32
      %19 = vector.broadcast %cst_8 : f32 to vector<16x128xf32>
      %20 = arith.subf %9, %19 : vector<16x128xf32>
      %21 = arith.mulf %20, %18 : vector<16x128xf32>
      %22 = arith.mulf %9, %13 : vector<16x128xf32>
      %23 = arith.subf %21, %22 : vector<16x128xf32>
      %c0_9 = arith.constant 0 : index
      %c0_10 = arith.constant 0 : index
      %c0_11 = arith.constant 0 : index
      %c0_12 = arith.constant 0 : index
      %24 = vector.load %arg4[%c0_9, %c0_10, %c0_11, %c0_12] : memref<1x4x8x128xf32, #tpu.memory_space<vmem>>, vector<1x1x8x128xf32>
      %25 = vector.shape_cast %24 : vector<1x1x8x128xf32> to vector<8x128xf32>
      %26 = vector.shape_cast %10 : vector<16x128xf32> to vector<2x8x128xf32>
      %cst_13 = arith.constant dense<0.000000e+00> : vector<8x128xf32>
      %27 = vector.multi_reduction <add>, %26, %cst_13 [0] : vector<2x8x128xf32> to vector<8x128xf32>
      %28 = arith.addf %25, %27 : vector<8x128xf32>
      %c0_14 = arith.constant 0 : index
      %c0_15 = arith.constant 0 : index
      %c0_16 = arith.constant 0 : index
      %c0_17 = arith.constant 0 : index
      %29 = vector.load %arg4[%c0_14, %c0_15, %c0_16, %c0_17] : memref<1x4x8x128xf32, #tpu.memory_space<vmem>>, vector<1x1x8x128xf32>
      %30 = vector.shape_cast %29 : vector<1x1x8x128xf32> to vector<8x128xf32>
      %31 = vector.shape_cast %28 : vector<8x128xf32> to vector<1x1x8x128xf32>
      tpu.vector_store %arg4[%c0_14, %c0_15, %c0_16, %c0_17], %31 {strides = array<i32>} : memref<1x4x8x128xf32, #tpu.memory_space<vmem>>, vector<1x1x8x128xf32>,
      %c0_18 = arith.constant 0 : index
      %c1 = arith.constant 1 : index
      %c0_19 = arith.constant 0 : index
      %c0_20 = arith.constant 0 : index
      %32 = vector.load %arg4[%c0_18, %c1, %c0_19, %c0_20] : memref<1x4x8x128xf32, #tpu.memory_space<vmem>>, vector<1x1x8x128xf32>
      %33 = vector.shape_cast %32 : vector<1x1x8x128xf32> to vector<8x128xf32>
      %34 = vector.shape_cast %8 : vector<16x128xf32> to vector<2x8x128xf32>
      %cst_21 = arith.constant dense<0.000000e+00> : vector<8x128xf32>
      %35 = vector.multi_reduction <add>, %34, %cst_21 [0] : vector<2x8x128xf32> to vector<8x128xf32>
      %36 = arith.addf %33, %35 : vector<8x128xf32>
      %c0_22 = arith.constant 0 : index
      %c1_23 = arith.constant 1 : index
      %c0_24 = arith.constant 0 : index
      %c0_25 = arith.constant 0 : index
      %37 = vector.load %arg4[%c0_22, %c1_23, %c0_24, %c0_25] : memref<1x4x8x128xf32, #tpu.memory_space<vmem>>, vector<1x1x8x128xf32>
      %38 = vector.shape_cast %37 : vector<1x1x8x128xf32> to vector<8x128xf32>
      %39 = vector.shape_cast %36 : vector<8x128xf32> to vector<1x1x8x128xf32>
      tpu.vector_store %arg4[%c0_22, %c1_23, %c0_24, %c0_25], %39 {strides = array<i32>} : memref<1x4x8x128xf32, #tpu.memory_space<vmem>>, vector<1x1x8x128xf32>,
      %c0_26 = arith.constant 0 : index
      %c2 = arith.constant 2 : index
      %c0_27 = arith.constant 0 : index
      %c0_28 = arith.constant 0 : index
      %40 = vector.load %arg4[%c0_26, %c2, %c0_27, %c0_28] : memref<1x4x8x128xf32, #tpu.memory_space<vmem>>, vector<1x1x8x128xf32>
      %41 = vector.shape_cast %40 : vector<1x1x8x128xf32> to vector<8x128xf32>
      %42 = vector.shape_cast %9 : vector<16x128xf32> to vector<2x8x128xf32>
      %cst_29 = arith.constant dense<0.000000e+00> : vector<8x128xf32>
      %43 = vector.multi_reduction <add>, %42, %cst_29 [0] : vector<2x8x128xf32> to vector<8x128xf32>
      %44 = arith.addf %41, %43 : vector<8x128xf32>
      %c0_30 = arith.constant 0 : index
      %c2_31 = arith.constant 2 : index
      %c0_32 = arith.constant 0 : index
      %c0_33 = arith.constant 0 : index
      %45 = vector.load %arg4[%c0_30, %c2_31, %c0_32, %c0_33] : memref<1x4x8x128xf32, #tpu.memory_space<vmem>>, vector<1x1x8x128xf32>
      %46 = vector.shape_cast %45 : vector<1x1x8x128xf32> to vector<8x128xf32>
      %47 = vector.shape_cast %44 : vector<8x128xf32> to vector<1x1x8x128xf32>
      tpu.vector_store %arg4[%c0_30, %c2_31, %c0_32, %c0_33], %47 {strides = array<i32>} : memref<1x4x8x128xf32, #tpu.memory_space<vmem>>, vector<1x1x8x128xf32>,
      %c0_34 = arith.constant 0 : index
      %c3 = arith.constant 3 : index
      %c0_35 = arith.constant 0 : index
      %c0_36 = arith.constant 0 : index
      %48 = vector.load %arg4[%c0_34, %c3, %c0_35, %c0_36] : memref<1x4x8x128xf32, #tpu.memory_space<vmem>>, vector<1x1x8x128xf32>
      %49 = vector.shape_cast %48 : vector<1x1x8x128xf32> to vector<8x128xf32>
      %50 = vector.shape_cast %23 : vector<16x128xf32> to vector<2x8x128xf32>
      %cst_37 = arith.constant dense<0.000000e+00> : vector<8x128xf32>
      %51 = vector.multi_reduction <add>, %50, %cst_37 [0] : vector<2x8x128xf32> to vector<8x128xf32>
      %52 = arith.addf %49, %51 : vector<8x128xf32>
      %c0_38 = arith.constant 0 : index
      %c3_39 = arith.constant 3 : index
      %c0_40 = arith.constant 0 : index
      %c0_41 = arith.constant 0 : index
      %53 = vector.load %arg4[%c0_38, %c3_39, %c0_40, %c0_41] : memref<1x4x8x128xf32, #tpu.memory_space<vmem>>, vector<1x1x8x128xf32>
      %54 = vector.shape_cast %53 : vector<1x1x8x128xf32> to vector<8x128xf32>
      %55 = vector.shape_cast %52 : vector<8x128xf32> to vector<1x1x8x128xf32>
      tpu.vector_store %arg4[%c0_38, %c3_39, %c0_40, %c0_41], %55 {strides = array<i32>} : memref<1x4x8x128xf32, #tpu.memory_space<vmem>>, vector<1x1x8x128xf32>,
    } else {
    }
    return
  }
  func.func @transform_0(%arg0: i32, %arg1: i32) -> (i32, i32) {
    %c1_i32 = arith.constant 1 : i32
    %0 = arith.muli %arg0, %c1_i32 : i32
    %1 = arith.addi %0, %arg1 : i32
    %c0_i32 = arith.constant 0 : i32
    %c0_i32_0 = arith.constant 0 : i32
    return %1, %c0_i32 : i32, i32
  }
  func.func @transform_1(%arg0: i32, %arg1: i32) -> (i32, i32) {
    %c1_i32 = arith.constant 1 : i32
    %0 = arith.muli %arg0, %c1_i32 : i32
    %1 = arith.addi %0, %arg1 : i32
    %c0_i32 = arith.constant 0 : i32
    %c0_i32_0 = arith.constant 0 : i32
    return %1, %c0_i32 : i32, i32
  }
  func.func @transform_2(%arg0: i32, %arg1: i32) -> (i32, i32, i32, i32) {
    %c0_i32 = arith.constant 0 : i32
    %c0_i32_0 = arith.constant 0 : i32
    %c0_i32_1 = arith.constant 0 : i32
    %c0_i32_2 = arith.constant 0 : i32
    return %arg0, %c0_i32, %c0_i32_0, %c0_i32_1 : i32, i32, i32, i32
  }
}

</mosaic_0001>

<bundles_post_ra>
// kernel: tpu_custom_call.1
= control target key start
LH: loop header
LB: loop body
LE: loop exit
PB: predicated region body
PF: predicated region fallthrough
CT: control target
= control target key end

     0   :  { %7 = vsyncpa [#allocation3], 0  ;;  %s283_s0 = inlined_call_operand.hbm [shape: f32[16,128], index: 0, kind: input, shape index: {}]   ;;  %s284_s1 = inlined_call_operand.hbm [shape: f32[16,128], index: 1, kind: input, shape index: {}]   ;;  %s285_s2 = inlined_call_operand.hbm [shape: f32[1,4,8,128], index: 2, kind: output, shape index: {}]  }
   0x1   :  { %8 = vsyncpa [#allocation6], 0 }
   0x2   :  { %9 = vsyncpa [#allocation4], 0  ;;  %s218_s9 = smov [#allocation2]   ;;  %s146_s13 = scalar_lea.hbm %s283_s0, 256 }
   0x3   :  { %s19_s10 = sshll.u32 %s218_s9, 4  ;;  %p147_p0 = scmp.ne.s32.totalorder %s283_s0, %s146_s13  ;;  %s20_s10 = int_to_ptr.vmem [resolvable:$true] %s19_s10 }
   0x4   :  { %p150_p1 = scmp.lt.u32.totalorder %s146_s13, %s283_s0 }
   0x6   :  { %p152_p2 = pnand %p150_p1, %p147_p0 }
   0x8   :  { %155 = shalt.err (!%p152_p2)
}
   0x9   :  { %s156_s18 = scalar_lea.vmem %s20_s10, 256  ;;  %p161_p4 = scmp.lt.s32.totalorder %s20_s10, %s20_s10 }
   0xa   :  { %p157_p3 = scmp.ne.s32.totalorder %s20_s10, %s156_s18  ;;  %p162_p5 = scmp.lt.s32.totalorder %s156_s18, %s156_s18 }
   0xc   :  { %p163_p6 = por %p162_p5, %p161_p4 }
   0xe   :  { %p164_p7 = pnand %p163_p6, %p157_p3 }
  0x10   :  { %167 = shalt.err (!%p164_p7)
}
  0x11   :  { %s219_s19 = smov 128   ;;  %s220_s20 = smov 8  }
  0x12   :  { %25 = dma.hbm_to_vmem [thread:$0]  %s283_s0, 256, %s20_s10, [#allocation3], %s219_s19, %s219_s19, %s220_s20  }
  0x13   :  { %s221_s23 = smov [#allocation5]   ;;  %s168_s27 = scalar_lea.hbm %s284_s1, 256 }
  0x14   :  { %s35_s24 = sshll.u32 %s221_s23, 4  ;;  %p169_p8 = scmp.ne.s32.totalorder %s284_s1, %s168_s27  ;;  %s36_s24 = int_to_ptr.vmem [resolvable:$true] %s35_s24 }
  0x15   :  { %p172_p9 = scmp.lt.u32.totalorder %s168_s27, %s284_s1 }
  0x17   :  { %p174_p10 = pnand %p172_p9, %p169_p8 }
  0x19   :  { %177 = shalt.err (!%p174_p10)
}
  0x1a   :  { %s178_s4 = scalar_lea.vmem %s36_s24, 256  ;;  %p183_p12 = scmp.lt.s32.totalorder %s36_s24, %s36_s24 }
  0x1b   :  { %p179_p11 = scmp.ne.s32.totalorder %s36_s24, %s178_s4  ;;  %p184_p13 = scmp.lt.s32.totalorder %s178_s4, %s178_s4 }
  0x1d   :  { %p185_p0 = por %p184_p13, %p183_p12 }
  0x1f   :  { %p186_p1 = pnand %p185_p0, %p179_p11 }
  0x21   :  { %189 = shalt.err (!%p186_p1)
}
  0x22   :  { %41 = dma.hbm_to_vmem [thread:$0]  %s284_s1, 256, %s36_s24, [#allocation6], %s219_s19, %s219_s19, %s220_s20  }
  0x23   :  { %212 = dma.done.wait [#allocation3], 256  }
  0x24   :  { %213 = vsyncadd [#allocation3], 4294967040 }
  0x25   :  { %214 = dma.done.wait [#allocation6], 256  }
  0x26   :  { %215 = vsyncadd [#allocation6], 4294967040  ;;  %v65_v0 = vld [vmem:[#allocation2] sm:$0xff]  ;;  %v66_v1 = vld [vmem:[#allocation2 + $0x8] sm:$0xff]  ;;  %s222_s1 = smov [#allocation7]  }
  0x27   :  { %v67_v2 = vld [vmem:[#allocation5] sm:$0xff]  ;;  %v68_v3 = vld [vmem:[#allocation5 + $0x8] sm:$0xff]  ;;  %v99_v5 = vadd.f32 %v66_v1, %v65_v0  ;;  %138 = vlog2.f32 %v65_v0  ;;  %v77_v6 = vsub.f32 1.0, %v65_v0  ;;  %v78_v9 = vsub.f32 1.0, %v66_v1  ;;  %s117_s6 = sshll.u32 %s222_s1, 4  ;;  %s118_s6 = int_to_ptr.vmem [resolvable:$true] %s117_s6 }
  0x28   :  { %v69_v4 = vmul.f32 %v67_v2, %v65_v0  ;;  %v70_v7 = vmul.f32 %v68_v3, %v66_v1  ;;  %v104_v8 = vadd.f32 %v68_v3, %v67_v2  ;;  %140 = vlog2.f32 %v66_v1  ;;  %s190_s7 = scalar_lea.vmem %s118_s6, 512  ;;  %p195_p3 = scmp.lt.s32.totalorder %s118_s6, %s118_s6 }
  0x29   :  { %142 = vlog2.f32 %v77_v6  ;;  %101 = vst [vmem:[#allocation7 + $0x8] sm:$0xff] %v99_v5  ;;  %v130_v19 = vadd.f32 -1.0, %v67_v2  ;;  %v131_v22 = vadd.f32 -1.0, %v68_v3  ;;  %p191_p2 = scmp.ne.s32.totalorder %s118_s6, %s190_s7  ;;  %p196_p4 = scmp.lt.s32.totalorder %s190_s7, %s190_s7 }
  0x2a   :  { %v94_v10 = vadd.f32 %v70_v7, %v69_v4  ;;  %144 = vlog2.f32 %v78_v9  ;;  %106 = vst [vmem:[#allocation7 + $0x10] sm:$0xff] %v104_v8 }
  0x2b   :  { %p197_p5 = por %p196_p4, %p195_p3 }
  0x2c   :  { %96 = vst [vmem:[#allocation7] sm:$0xff] %v94_v10 }
  0x2d   :  { %p198_p6 = pnand %p197_p5, %p191_p2 }
  0x31   :  { %v139_v11 = vpop.eup %138 }
  0x32   :  { %v141_v12 = vpop.eup %140  ;;  %v72_v13 = vmul.f32 0.6931472, %v139_v11 }
  0x33   :  { %v143_v14 = vpop.eup %142  ;;  %v74_v15 = vmul.f32 0.6931472, %v141_v12 }
  0x34   :  { %v145_v16 = vpop.eup %144  ;;  %v75_v17 = vmax.f32 %v72_v13, -100.0  ;;  %v80_v18 = vmul.f32 0.6931472, %v143_v14 }
  0x35   :  { %v76_v20 = vmax.f32 %v74_v15, -100.0  ;;  %v82_v21 = vmul.f32 0.6931472, %v145_v16 }
  0x36   :  { %v83_v23 = vmax.f32 %v80_v18, -100.0  ;;  %v89_v24 = vmul.f32 %v75_v17, %v67_v2 }
  0x37   :  { %v84_v25 = vmax.f32 %v82_v21, -100.0  ;;  %v90_v26 = vmul.f32 %v76_v20, %v68_v3 }
  0x38   :  { %v87_v27 = vmul.f32 %v130_v19, %v83_v23 }
  0x39   :  { %v88_v28 = vmul.f32 %v131_v22, %v84_v25 }
  0x3a   :  { %v91_v29 = vsub.f32 %v87_v27, %v89_v24 }
  0x3b   :  { %v92_v30 = vsub.f32 %v88_v28, %v90_v26 }
  0x3d   :  { %v109_v31 = vadd.f32 %v92_v30, %v91_v29 }
  0x3f   :  { %111 = vst [vmem:[#allocation7 + $0x18] sm:$0xff] %v109_v31 }
  0x40   :  { %201 = shalt.err (!%p198_p6)
}
  0x41   :  { %s202_s10 = scalar_lea.hbm %s285_s2, 512 }
  0x42   :  { %p203_p7 = scmp.ne.s32.totalorder %s285_s2, %s202_s10  ;;  %p206_p8 = scmp.lt.u32.totalorder %s202_s10, %s285_s2 }
  0x44   :  { %p208_p9 = pnand %p206_p8, %p203_p7 }
  0x46   :  { %211 = shalt.err (!%p208_p9)
}
  0x47   :  { %123 = dma.vmem_to_hbm [thread:$0]  %s118_s6, 512, %s285_s2, [#allocation4], %s219_s19, %s219_s19, %s220_s20  }
  0x48   :  { %216 = dma.done.wait [#allocation4], 512  }
  0x49   :  { %217 = vsyncadd [#allocation4], 4294966784 }
  0x4a   :  { %127 = vsyncpa [#allocation3], 1 }
  0x4b   :  { %128 = vsyncpa [#allocation6], 1 }
  0x4c   :  { %129 = vsyncpa [#allocation4], 1 }

</bundles_post_ra>
